<compile_context>
chip_gen: v7x
topology: tpu7x:2x2x1
jax: 0.10.0
libtpu: 0.0.40
codegen_flags: <defaults>
</compile_context>

<pallas_src>
import functools
import math

import jax
import jax.numpy as jnp
from jax.experimental import pallas as pl
from jax.experimental.pallas import tpu as pltpu


def _ctg_kernel(x_ref, w_ref, b_ref, s_ref, abd_ref, o_ref, *, adjacency_first):
    """One (t-tile, batch) grid step.

    x_ref   : (1, C_in,  L)   input slab, L = TT * Vp lanes (compute dtype)
    w_ref   : (C_out, C_in)   1x1 conv weight (resident; constant index map)
    b_ref   : (C_out, 1)      conv bias, f32 (resident)
    s_ref   : (1, 1, L)       column sums of A_bd for this tile, f32 (resident per tile)
    abd_ref : (1, L, L)       block-diagonal adjacency for this t-tile (resident per tile)
    o_ref   : (1, C_out, L)   output slab, f32
    """
    if adjacency_first:
        # out = W @ (X @ A_bd) + b * colsum(A_bd): cheaper when C_in < C_out.
        w = w_ref[...]
        z = jnp.dot(x_ref[0], abd_ref[0], preferred_element_type=jnp.float32)   # (C_in, L)
        acc = jnp.dot(w, z.astype(w.dtype), preferred_element_type=jnp.float32)  # (C_out, L)
        o_ref[0] = (acc + b_ref[...] * s_ref[0]).astype(o_ref.dtype)
    else:
        # out = (W @ X + b) @ A_bd: cheaper when C_out <= C_in.
        abd = abd_ref[0]
        y = jnp.dot(w_ref[...], x_ref[0], preferred_element_type=jnp.float32)    # (C_out, L)
        y = y + b_ref[...]
        o_ref[0] = jnp.dot(y.astype(abd.dtype), abd,
                           preferred_element_type=jnp.float32).astype(o_ref.dtype)


def _choose_tiling(T, V, max_lanes):
    """Pick (TT, Vp): TT temporal frames per tile and (possibly padded) node count Vp,
    such that TT divides T and L = TT * Vp is a multiple of 128 (lane-dense blocks,
    unmasked stores). Falls back to TT=1 with V zero-padded up to a 128 multiple."""
    cands = [tt for tt in range(1, T + 1)
             if T % tt == 0 and (tt * V) % 128 == 0 and tt * V <= max_lanes]
    if cands:
        return max(cands), V
    return 1, ((V + 127) // 128) * 128


def conv_temporal_graphical(x_nchw, A, weight, bias, *,
                            max_tile_lanes=256,      # use 128 on v5e (128x128 MXU)
                            compute_dtype=jnp.bfloat16,
                            out_dtype=jnp.float32):
    """x_nchw: (N, C_in, T, V); A: (K, V, V) with K == T (required by the reference
    einsum); weight: (C_out, C_in); bias: (C_out,). Returns ((N, C_out, T, V), A)."""
    N, C_in, T, V = x_nchw.shape
    K = A.shape[0]
    assert K == T, "reference einsum 'nctv,tvw->nctw' requires A.shape[0] == T"
    C_out, C_in_w = weight.shape
    assert C_in_w == C_in

    TT, Vp = _choose_tiling(T, V, max_tile_lanes)
    n_tiles = T // TT
    L = TT * Vp                                   # lane extent of each block

    # Zero-pad V up to Vp if needed (padded A rows/cols are zero -> no contamination).
    x_p = x_nchw if Vp == V else jnp.pad(x_nchw, ((0, 0), (0, 0), (0, 0), (0, Vp - V)))
    A_p = A if Vp == V else jnp.pad(A, ((0, 0), (0, Vp - V), (0, Vp - V)))

    # Free row-major view: fold (T, Vp) into one lane-dense axis. No transposes.
    x2 = x_p.reshape(N, C_in, T * Vp).astype(compute_dtype)

    # Per-tile block-diagonal adjacency, diagonal blocks written in place:
    #   A_bd[j, t*Vp + v, t*Vp + w] = A_p[j*TT + t, v, w]
    A_r = A_p.reshape(n_tiles, TT, Vp, Vp)
    A_bd = jnp.zeros((n_tiles, L, L), dtype=A_p.dtype)
    for t in range(TT):
        A_bd = A_bd.at[:, t * Vp:(t + 1) * Vp, t * Vp:(t + 1) * Vp].set(A_r[:, t])
    # Column sums of A_bd: carries the bias through when the adjacency contraction
    # is applied before the 1x1 conv (out = W(X A_bd) + b * colsum(A_bd)).
    s_col = A_r.sum(axis=2).reshape(n_tiles, 1, L).astype(jnp.float32)

    A_bd = A_bd.astype(compute_dtype)
    w = weight.astype(compute_dtype)
    b2d = bias.reshape(C_out, 1).astype(jnp.float32)

    adjacency_first = C_in < C_out
    kernel = functools.partial(_ctg_kernel, adjacency_first=adjacency_first)

    # Cost estimate (helps XLA schedule neighbors around the custom call).
    inner_rows = C_in if adjacency_first else C_out
    flops = 2 * N * n_tiles * (C_out * C_in * L + inner_rows * L * L)
    out_isize = jnp.dtype(out_dtype).itemsize
    bytes_accessed = (x2.size * x2.dtype.itemsize
                      + w.size * w.dtype.itemsize
                      + b2d.size * 4 + s_col.size * 4
                      + A_bd.size * A_bd.dtype.itemsize
                      + N * C_out * T * Vp * out_isize)

    # VMEM budget from the actual double-buffered block sizes (+ headroom), sized to
    # fit v7x's 64 MiB physical VMEM as well as v5e/v6e.
    c_isize = jnp.dtype(compute_dtype).itemsize
    per_step = (2 * C_in * L * c_isize            # x block
                + 2 * C_out * C_in * c_isize      # weight
                + 2 * C_out * 4                   # bias
                + 2 * L * 4                       # colsum row
                + 2 * L * L * c_isize             # A_bd block
                + 2 * C_out * L * out_isize)      # output block
    vmem_limit = int(min(60 * 1024 * 1024, max(8 * 1024 * 1024, 4 * per_step)))

    out2 = pl.pallas_call(
        kernel,
        out_shape=jax.ShapeDtypeStruct((N, C_out, T * Vp), out_dtype),
        grid_spec=pltpu.PrefetchScalarGridSpec(
            num_scalar_prefetch=0,
            # Tile axis outermost, batch innermost: A_bd / s / W / b blocks are
            # unchanged across the inner batch sweep -> resident, no per-step re-DMA.
            grid=(n_tiles, N),
            in_specs=[
                pl.BlockSpec((1, C_in, L), lambda j, n: (n, 0, j)),
                pl.BlockSpec((C_out, C_in), lambda j, n: (0, 0)),    # resident
                pl.BlockSpec((C_out, 1), lambda j, n: (0, 0)),       # resident
                pl.BlockSpec((1, 1, L), lambda j, n: (j, 0, 0)),     # resident per tile
                pl.BlockSpec((1, L, L), lambda j, n: (j, 0, 0)),     # resident per tile
            ],
            out_specs=pl.BlockSpec((1, C_out, L), lambda j, n: (n, 0, j)),
        ),
        compiler_params=pltpu.CompilerParams(
            dimension_semantics=("parallel", "parallel"),
            vmem_limit_bytes=vmem_limit,
        ),
        cost_estimate=pl.CostEstimate(flops=int(flops), transcendentals=0,
                                      bytes_accessed=int(bytes_accessed)),
    )(x2, w, b2d, s_col, A_bd)

    out = out2.reshape(N, C_out, T, Vp)           # free view back to (N, C_out, T, Vp)
    if Vp != V:
        out = out[..., :V]                        # drop zero-padded graph nodes
    return out, A


def _reference(x, A, weight, bias):
    # Pure-JAX reference of the PyTorch forward (1x1 conv + einsum), f32.
    y = jnp.einsum("nctv,oc->notv", x, weight) + bias[None, :, None, None]
    return jnp.einsum("nctv,tvw->nctw", y, A)


def _make_inputs(key, N, C_in, C_out, T, V):
    kx, ka, kw, kb = jax.random.split(key, 4)
    x = jax.random.normal(kx, (N, C_in, T, V), dtype=jnp.float32)
    A = jax.random.normal(ka, (T, V, V), dtype=jnp.float32)
    # Deterministic init mimicking nn.Conv2d(C_in, C_out, (1,1)) param shapes:
    # weight (C_out, C_in, 1, 1) -> squeezed to (C_out, C_in); bias (C_out,).
    bound = 1.0 / math.sqrt(C_in * 1 * 1)
    weight = jax.random.uniform(kw, (C_out, C_in), jnp.float32, -bound, bound)
    bias = jax.random.uniform(kb, (C_out,), jnp.float32, -bound, bound)
    return x, A, weight, bias


if __name__ == "__main__":
    key = jax.random.PRNGKey(0)
    # (name, N, C_in, C_out, T, V, compute_dtype, atol, rtol)
    cases = [
        ("bf16 adjacency-first", 2, 4, 8, 8, 16, jnp.bfloat16, 3e-1, 1e-1),
        ("f32  adjacency-first", 2, 4, 8, 8, 16, jnp.float32, 5e-4, 5e-4),
        ("f32  conv-first",      2, 8, 4, 8, 16, jnp.float32, 5e-4, 5e-4),
        ("f32  padded lanes",    2, 4, 8, 6, 12, jnp.float32, 5e-4, 5e-4),
    ]
    for i, (name, N, C_in, C_out, T, V, cdt, atol, rtol) in enumerate(cases):
        x, A, weight, bias = _make_inputs(jax.random.fold_in(key, i),
                                          N, C_in, C_out, T, V)
        out, A_out = conv_temporal_graphical(x, A, weight, bias, compute_dtype=cdt)
        out = jax.block_until_ready(out)

        ref = _reference(x, A, weight, bias)
        assert out.shape == (N, C_out, T, V), name
        assert jnp.allclose(out, ref, atol=atol, rtol=rtol), \
            f"mismatch vs reference: {name}"
        assert jnp.array_equal(A_out, A), name

    print("KERNEL_OK")
</pallas_src>

<mosaic_0001>
module attributes {stable_mosaic.version = 11 : i64} {
  func.func @_ctg_kernel(%arg0: i32, %arg1: i32, %arg2: memref<1x4x128xbf16, #tpu.memory_space<vmem>>, %arg3: memref<8x4xbf16, #tpu.memory_space<vmem>>, %arg4: memref<8x1xf32, #tpu.memory_space<vmem>>, %arg5: memref<1x1x128xf32, #tpu.memory_space<vmem>>, %arg6: memref<1x128x128xbf16, #tpu.memory_space<vmem>>, %arg7: memref<1x8x128xf32, #tpu.memory_space<vmem>>) attributes {dimension_semantics = [#tpu.dimension_semantics<parallel>, #tpu.dimension_semantics<parallel>], iteration_bounds = array<i64: 1, 2>, scalar_prefetch = 0 : i64, scratch_operands = 0 : i64, tpu.core_type = #tpu.core_type<tc>, window_params = [{transform_indices = @transform_0, window_bounds = array<i64: 1, 4, 128>}, {pipeline_mode = #tpu.pipeline_mode<synchronous>, transform_indices = @transform_1, window_bounds = array<i64: 8, 4>}, {pipeline_mode = #tpu.pipeline_mode<synchronous>, transform_indices = @transform_2, window_bounds = array<i64: 8, 1>}, {transform_indices = @transform_3, window_bounds = array<i64: 1, 1, 128>}, {transform_indices = @transform_4, window_bounds = array<i64: 1, 128, 128>}, {transform_indices = @transform_5, window_bounds = array<i64: 1, 8, 128>}]} {
    %c0 = arith.constant 0 : index
    %c0_0 = arith.constant 0 : index
    %0 = vector.load %arg3[%c0, %c0_0] : memref<8x4xbf16, #tpu.memory_space<vmem>>, vector<8x4xbf16>
    %c0_1 = arith.constant 0 : index
    %c0_2 = arith.constant 0 : index
    %c0_3 = arith.constant 0 : index
    %1 = vector.load %arg2[%c0_1, %c0_2, %c0_3] : memref<1x4x128xbf16, #tpu.memory_space<vmem>>, vector<1x4x128xbf16>
    %2 = vector.shape_cast %1 : vector<1x4x128xbf16> to vector<4x128xbf16>
    %c0_4 = arith.constant 0 : index
    %c0_5 = arith.constant 0 : index
    %c0_6 = arith.constant 0 : index
    %3 = vector.load %arg6[%c0_4, %c0_5, %c0_6] : memref<1x128x128xbf16, #tpu.memory_space<vmem>>, vector<1x128x128xbf16>
    %4 = vector.shape_cast %3 : vector<1x128x128xbf16> to vector<128x128xbf16>
    %cst = arith.constant dense<0.000000e+00> : vector<4x128xf32>
    %5 = tpu.matmul %2, %4, %cst {dimension_numbers = #tpu.dot_dimension_numbers<[1], [0], [0], [1], [0, 0, 1, 1], [], []>} : vector<4x128xbf16>, vector<128x128xbf16>, vector<4x128xf32> -> vector<4x128xf32>
    %6 = arith.truncf %5 : vector<4x128xf32> to vector<4x128xbf16>
    %cst_7 = arith.constant dense<0.000000e+00> : vector<8x128xf32>
    %7 = tpu.matmul %0, %6, %cst_7 {dimension_numbers = #tpu.dot_dimension_numbers<[1], [0], [0], [1], [0, 0, 1, 1], [], []>} : vector<8x4xbf16>, vector<4x128xbf16>, vector<8x128xf32> -> vector<8x128xf32>
    %c0_8 = arith.constant 0 : index
    %c0_9 = arith.constant 0 : index
    %8 = vector.load %arg4[%c0_8, %c0_9] : memref<8x1xf32, #tpu.memory_space<vmem>>, vector<8x1xf32>
    %c0_10 = arith.constant 0 : index
    %c0_11 = arith.constant 0 : index
    %c0_12 = arith.constant 0 : index
    %9 = vector.load %arg5[%c0_10, %c0_11, %c0_12] : memref<1x1x128xf32, #tpu.memory_space<vmem>>, vector<1x1x128xf32>
    %10 = vector.shape_cast %9 : vector<1x1x128xf32> to vector<1x128xf32>
    %11 = vector.broadcast %8 : vector<8x1xf32> to vector<8x128xf32>
    %12 = vector.broadcast %10 : vector<1x128xf32> to vector<8x128xf32>
    %13 = arith.mulf %11, %12 : vector<8x128xf32>
    %14 = arith.addf %7, %13 : vector<8x128xf32>
    %c0_13 = arith.constant 0 : index
    %c0_14 = arith.constant 0 : index
    %c0_15 = arith.constant 0 : index
    %15 = vector.load %arg7[%c0_13, %c0_14, %c0_15] : memref<1x8x128xf32, #tpu.memory_space<vmem>>, vector<1x8x128xf32>
    %16 = vector.shape_cast %15 : vector<1x8x128xf32> to vector<8x128xf32>
    %17 = vector.shape_cast %14 : vector<8x128xf32> to vector<1x8x128xf32>
    tpu.vector_store %arg7[%c0_13, %c0_14, %c0_15], %17 {strides = array<i32>} : memref<1x8x128xf32, #tpu.memory_space<vmem>>, vector<1x8x128xf32>,
    return
  }
  func.func @transform_0(%arg0: i32, %arg1: i32) -> (i32, i32, i32) {
    %c0_i32 = arith.constant 0 : i32
    %c0_i32_0 = arith.constant 0 : i32
    return %arg1, %c0_i32, %arg0 : i32, i32, i32
  }
  func.func @transform_1(%arg0: i32, %arg1: i32) -> (i32, i32) {
    %c0_i32 = arith.constant 0 : i32
    %c0_i32_0 = arith.constant 0 : i32
    %c0_i32_1 = arith.constant 0 : i32
    return %c0_i32, %c0_i32_0 : i32, i32
  }
  func.func @transform_2(%arg0: i32, %arg1: i32) -> (i32, i32) {
    %c0_i32 = arith.constant 0 : i32
    %c0_i32_0 = arith.constant 0 : i32
    %c0_i32_1 = arith.constant 0 : i32
    return %c0_i32, %c0_i32_0 : i32, i32
  }
  func.func @transform_3(%arg0: i32, %arg1: i32) -> (i32, i32, i32) {
    %c0_i32 = arith.constant 0 : i32
    %c0_i32_0 = arith.constant 0 : i32
    %c0_i32_1 = arith.constant 0 : i32
    return %arg0, %c0_i32, %c0_i32_0 : i32, i32, i32
  }
  func.func @transform_4(%arg0: i32, %arg1: i32) -> (i32, i32, i32) {
    %c0_i32 = arith.constant 0 : i32
    %c0_i32_0 = arith.constant 0 : i32
    %c0_i32_1 = arith.constant 0 : i32
    return %arg0, %c0_i32, %c0_i32_0 : i32, i32, i32
  }
  func.func @transform_5(%arg0: i32, %arg1: i32) -> (i32, i32, i32) {
    %c0_i32 = arith.constant 0 : i32
    %c0_i32_0 = arith.constant 0 : i32
    return %arg1, %c0_i32, %arg0 : i32, i32, i32
  }
}

</mosaic_0001>

<bundles_post_ra>
// kernel: tpu_custom_call.1
= control target key start
LH: loop header
LB: loop body
LE: loop exit
PB: predicated region body
PF: predicated region fallthrough
CT: control target
= control target key end

     0   :  { %10 = vsyncpa [#allocation3], 0  ;;  %s1014_s0 = inlined_call_operand.vmem [shape: bf16[2,4,128], index: 0, kind: input, shape index: {}]   ;;  %s1015_s1 = inlined_call_operand.vmem [shape: bf16[8,4], index: 1, kind: input, shape index: {}]   ;;  %s1016_s2 = inlined_call_operand.vmem [shape: f32[8,1], index: 2, kind: input, shape index: {}]   ;;  %s1017_s3 = inlined_call_operand.vmem [shape: f32[1,1,128], index: 3, kind: input, shape index: {}]   ;;  %s1018_s4 = inlined_call_operand.hbm [shape: bf16[1,128,128], index: 4, kind: input, shape index: {}]   ;;  %s1019_s5 = inlined_call_operand.hbm [shape: f32[2,8,128], index: 5, kind: output, shape index: {}]  }
   0x1   :  { %11 = vsyncpa [#allocation4], 0 }
   0x2   :  { %13 = vsyncpa [#allocation4 + $0x1], 0  ;;  %s855_s18 = smov 0   ;;  %s857_s19 = smov 0  }
   0x3   :  { %s859_s20 = smov 0   ;;  %s861_s21 = smov 0  }
   0x4   :  { %s863_s22 = smov 0   ;;  %s865_s23 = smov 0  }
   0x5 LB: > { %s565_s24 = sadd.s32 4294967295, %s816_s23   ;;  %s566_s25 = sadd.s32 4294967294, %s816_s23   ;;  %s816_s23 = sphi %s865_s23, %s19_s23   ;;  %s812_s22 = sphi %s863_s22, %s1037_s22   ;;  %s808_s21 = sphi %s861_s21, %s1036_s21   ;;  %s804_s20 = sphi %s859_s20, %s1035_s20   ;;  %s800_s19 = sphi %s857_s19, %s1034_s19   ;;  %s796_s18 = sphi %s855_s18, %s1033_s18  }
   0x6   : > { %s28_s26 = sadd.s32 1, %s812_s22  ;;  %s162_s27 = sadd.s32 1, %s804_s20 }
   0x7   : > { %p29_p0 = scmp.ge.s32.totalorder %s28_s26, 2  ;;  %p172_p1 = scmp.ne.s32.totalorder %s804_s20, %s800_s19 }
   0x8   : > { %p173_p2 = scmp.eq.s32.totalorder %s565_s24, 1  ;;  %p178_p3 = scmp.ne.s32.totalorder %s800_s19, %s796_s18 }
   0x9   : > { %s1039_s26 = smov (%p29_p0, %s28_s26), 0  ;;  %p179_p5 = scmp.eq.s32.totalorder %s566_s25, 1 }
   0xa   : > { %p895_p4 = por %p173_p2, %p172_p1  ;;  %s157_s29 = ssub.s32 %s812_s22, %s1039_s26 }
   0xb   : > { %p567_p6 = scmp.ge.s32.totalorder %s816_s23, 1  ;;  %p160_p7 = scmp.eq.s32.totalorder %s157_s29, 0 }
   0xc   : > { %s1024_s28 = scalar_select %p895_p4, 1, 0 }
   0xd   : > { %p902_p8 = por %p179_p5, %p178_p3  ;;  %p186_p9 = scmp.lt.s32.totalorder %s816_s23, 3 }
   0xe   : > { %s908_s6 = scalar_select %p160_p7, %s804_s20, %s162_s27  }
   0xf   : > { %s1025_s30 = scalar_select %p902_p8, 1, 0 }
  0x10   : > { %p910_p10 = pnand %p567_p6, %p186_p9  ;;  %p914_p11 = scmp.eq.s32.totalorder %s565_s24, 0 }
  0x11   : > { %s818_s9 = smov [#allocation2]   ;;  %s706_s14 = scalar_lea.hbm %s1018_s4, 1024 }
  0x12   : > { %s1026_s7 = scalar_select %p910_p10, 1, 0 }
  0x13   : > { %s1027_s8 = scalar_select %p914_p11, 1, 0 }
  0x14   : > { %p632_p12 = pneg %p910_p10  ;;  %s213_s10 = sshll.u32 %s818_s9, 4  ;;  %s214_s10 = int_to_ptr.vmem [resolvable:$true] %s213_s10 }
  0x15   : > { %p707_p0 = scmp.ne.s32.totalorder %s1018_s4, %s706_s14  ;;  %p713_p5 = scmp.lt.u32.totalorder %s706_s14, %s1018_s4 }
  0x16   : > { %p922_p13 = pnand %p914_p11, %p632_p12 }
  0x18   : > { %p708_p1 = pneg %p922_p13 }
  0x1a   : > { %p709_p2 = pnand %p708_p1, %p707_p0 }
  0x1c   : > { %p710_p3 = pneg %p709_p2 }
  0x1e   : > { %p715_p6 = pnand %p713_p5, %p710_p3 }
  0x20   : > { %718 = shalt.err (!%p715_p6)
}
  0x21   : > { %s719_s25 = scalar_lea.vmem %s214_s10, 1024  ;;  %p727_p8 = scmp.lt.s32.totalorder %s214_s10, %s214_s10 }
  0x22   : > { %p720_p7 = scmp.ne.s32.totalorder %s214_s10, %s719_s25  ;;  %p728_p4 = scmp.lt.s32.totalorder %s719_s25, %s719_s25 }
  0x24   : > { %p722_p9 = pnand %p720_p7, %p708_p1  ;;  %p729_p11 = por %p728_p4, %p727_p8 }
  0x26   : > { %p723_p12 = pneg %p722_p9 }
  0x28   : > { %p730_p10 = pnand %p729_p11, %p723_p12 }
  0x2a   : > { %733 = shalt.err (!%p730_p10)
}
  0x2b   : > { %s819_s27 = smov 64   ;;  %s820_s29 = smov 4  }
  0x2c   : > { %635 = dma.hbm_to_vmem [thread:$0]  (!%p922_p13), %s1018_s4, 1024, %s214_s10, [#allocation3], %s819_s27, %s819_s27, %s820_s29  }
  0x2d   : > { %p1029_p0 = scmp.ne.s32.totalorder %s1026_s7, 0 }
  0x2e   : > { %p1030_p2 = scmp.ne.s32.totalorder (!%p1029_p0), %s1027_s8, 0 }
  0x2f   : > { %239 = sbr.rel (%p1029_p0) target bundleno = 535 (0x217), region = 40 }
  0x36   : > { %787 = dma.done.wait (%p1030_p2), [#allocation3], 1024  }
  0x37   : > { %789 = vsyncadd (%p1030_p2), [#allocation3], 4294966272  ;;  %v821_v0 = vmov 0.0   ;;  %vm822_vm0 = vmmov 0   ;;  %v698_v1 = vld [vmem:[#allocation2] sm:$0xff]   ;;  %v699_v2 = vld [vmem:[#allocation2 + $0x8] sm:$0xff]  }
  0x38   : > { %600 = vmatprep.subr.bf16.mxu0 %v821_v0  ;;  %616 = vmatprep.mubr.msk.bf16.mxu0 %vm822_vm0, %v821_v0  ;;  %v700_v3 = vld [vmem:[#allocation2 + $0x10] sm:$0xff]   ;;  %v701_v4 = vld [vmem:[#allocation2 + $0x18] sm:$0xff]   ;;  %v702_v5 = vld [vmem:[#allocation2 + $0x20] sm:$0xff]   ;;  %p272_p4 = scmp.lt.s32.totalorder %s808_s21, 1  ;;  %v823_v11 = vmov 0   ;;  %vm408_vm1 = vcmask 1041408  }
  0x39   : > { %620 = vmatprep.subr.bf16.mxu1 %v821_v0  ;;  %622 = vmatprep.mubr.msk.bf16.mxu1 %vm822_vm0, %v821_v0  ;;  %v703_v6 = vld [vmem:[#allocation2 + $0x28] sm:$0xff]   ;;  %v704_v7 = vld [vmem:[#allocation2 + $0x30] sm:$0xff]   ;;  %v705_v8 = vld [vmem:[#allocation2 + $0x38] sm:$0xff]   ;;  %vm404_vm2 = vcmask 31744   ;;  %s269_s24 = sand.u32 1, %s800_s19   ;;  %s586_s9 = sshll.u32 %s808_s21, 7 }
  0x3a   : > { %601 = vmatpush3.bf16.msra.mxu0 %v698_v1  ;;  %s273_s7 = scalar_select %p272_p4, %s808_s21, 1  ;;  %v390_v10 = vld [vmem:[%s1016_s2] sm:$0xff]  ;;  %697 = vset.pattern.permute.xlu0 %v823_v11 }
  0x3b   : > { %602 = vmatprep.subr.bf16.mxu0 %v821_v0  ;;  %394 = vperm.xlu0 %697, %v390_v10   ;;  %v283_v18 = vld [vmem:[%s1015_s1] sm:$0xf]  ;;  %s573_s25 = sshll.u32 %s269_s24, 3  ;;  %s967_s11 = scalar_lea.hbm %s1019_s5, %s586_s9 }
  0x3c   : > { %s574_s8 = sshll.u32 %s273_s7, 1  ;;  %v583_v19 = vld [vmem:[%s1017_s3] ss:$0 sm:$0xff]  ;;  %s271_s12 = scalar_lea.vmem [#allocation5], %s573_s25 }
  0x3d   : > { %s278_s13 = scalar_lea.vmem %s1014_s0, %s574_s8  ;;  %s468_s7 = sshll.u32 %s271_s12, 4  ;;  %s969_s7 = int_to_ptr.vmem [resolvable:$true] %s468_s7 }
  0x3e   : > { %603 = vmatpush3.bf16.msra.mxu0 %v699_v2  ;;  %v284_v9 = vld [vmem:[%s278_s13] sm:$0x3]  ;;  %s454_s13 = scalar_lea.sflag [#allocation4], %s269_s24  ;;  %s734_s21 = scalar_lea.vmem %s969_s7, 128 }
  0x3f   : > { %604 = vmatprep.subr.bf16.mxu0 %v821_v0  ;;  %p735_p8 = scmp.ne.s32.totalorder %s969_s7, %s734_s21  ;;  %p1031_p10 = scmp.ne.s32.totalorder %s1024_s28, 0 }
  0x40   : > { %s824_s14 = smov [#allocation5]  }
  0x41   : > { %p736_p11 = pnand %p735_p8, %p1031_p10  ;;  %s738_s15 = sshll.u32 %s824_s14, 4  ;;  %s739_s15 = int_to_ptr.vmem [resolvable:$false] %s738_s15 }
  0x42   : > { %605 = vmatpush3.bf16.msra.mxu0 %v700_v3  ;;  %s740_s16 = scalar_lea.vmem %s739_s15, 256  ;;  %p741_p1 = scmp.lt.s32.totalorder %s969_s7, %s739_s15 }
  0x43   : > { %606 = vmatprep.subr.bf16.mxu0 %v821_v0  ;;  %p737_p13 = pneg %p736_p11  ;;  %p742_p3 = scmp.lt.s32.totalorder %s740_s16, %s734_s21 }
  0x45   : > { %p743_p5 = por %p742_p3, %p741_p1 }
  0x46   : > { %607 = vmatpush3.bf16.msra.mxu0 %v701_v4 }
  0x47   : > { %608 = vmatprep.subr.bf16.mxu0 %v821_v0  ;;  %p744_p6 = pnand %p743_p5, %p737_p13 }
  0x4a   : > { %609 = vmatpush3.bf16.msra.mxu0 %v702_v5 }
  0x4b   : > { %610 = vmatprep.subr.bf16.mxu0 %v821_v0 }
  0x4e   : > { %611 = vmatpush3.bf16.msra.mxu0 %v703_v6 }
  0x4f   : > { %612 = vmatprep.subr.bf16.mxu0 %v821_v0 }
  0x52   : > { %613 = vmatpush3.bf16.msra.mxu0 %v704_v7 }
  0x53   : > { %614 = vmatprep.subr.bf16.mxu0 %v821_v0 }
  0x56   : > { %615 = vmatpush3.bf16.msra.mxu0 %v705_v8 }
  0x59   : > { %617 = vmatmul.mubr.bf16.vlgmr.msra.gmra.mrb[0].mxu0 %v284_v9 }
  0xba   : > { %v395_v20 = vpop.permute.xlu0 %394 }
  0xbb   : > { %v403_v21 = vmul.f32 %v583_v19, %v395_v20 }
 0x12c   : > { %v383_v12 = vpop.f32.mrb[0].mxu0 }
 0x12d   : > { %v389_v13 = vpack.c.bf16 %v383_v12, %v383_v12  ;;  %v618_v14 = vpop.f32.mrb[1].mxu0 }
 0x12e   : > { %v386_v15 = vpop.f32.mrb[2].mxu0 }
 0x12f   : > { %v619_v16 = vpop.f32.mrb[3].mxu0  ;;  %v410_v17 = vsel %vm408_vm1, %v389_v13, 0 }
 0x130   : > { %621 = vmatpush3.bf16.msra.mxu1 %v410_v17 }
 0x133   : > { %623 = vmatmul.mubr.msk.bf16.vlgmr.msra.gmra.mrb[0].mxu1 %vm404_vm2, %v283_v18 }
 0x206   : > { %v446_v22 = vpop.f32.mrb[0].mxu1 }
 0x207   : > { %v447_v23 = vadd.f32 %v446_v22, %v403_v21  ;;  %v624_v24 = vpop.f32.mrb[1].mxu1 }
 0x208   : > { %v449_v25 = vpop.f32.mrb[2].mxu1 }
 0x209   : > { %452 = vst [vmem:[%s271_s12] sm:$0xff] %v447_v23  ;;  %v625_v26 = vpop.f32.mrb[3].mxu1 }
 0x20a   : > { %747 = shalt.err (!%p744_p6)
}
 0x20b   : > { %s748_s17 = scalar_lea.hbm %s967_s11, 128  ;;  %s752_s27 = scalar_lea.hbm %s1019_s5, 256 }
 0x20c   : > { %p749_p7 = scmp.ne.s32.totalorder %s967_s11, %s748_s17  ;;  %p753_p0 = scmp.lt.u32.totalorder %s967_s11, %s1019_s5 }
 0x20d   : > { %p754_p2 = scmp.lt.u32.totalorder %s752_s27, %s748_s17  ;;  %p756_p8 = scmp.lt.u32.totalorder %s748_s17, %s967_s11 }
 0x20e   : > { %p750_p9 = pnand %p749_p7, %p1031_p10 }
 0x20f   : > { %p755_p4 = por %p754_p2, %p753_p0 }
 0x210   : > { %p751_p12 = pneg %p750_p9 }
 0x211   : > { %p757_p11 = por %p756_p8, %p755_p4 }
 0x213   : > { %p758_p13 = pnand %p757_p11, %p751_p12 }
 0x215   : > { %761 = shalt.err (!%p758_p13)
}
 0x216   : > { %630 = dma.vmem_to_hbm [thread:$0]  (%p1031_p10), %s969_s7, 128, %s967_s11, %s454_s13  }
 0x217 PF: > { %p642_p1 = scmp.ge.s32.totalorder %s816_s23, 2  ;;  %s480_s12 = sand.u32 1, %s796_s18  }
 0x218   : > { %p1032_p3 = scmp.ne.s32.totalorder %s1025_s30, 0  ;;  %s481_s8 = scalar_lea.sflag [#allocation4], %s480_s12 }
 0x21a   : > { %p637_p5 = pnand %p642_p1, %p1032_p3 }
 0x21c   : > { %791 = dma.done.wait (!%p637_p5), %s481_s8, 128  }
 0x21d   : > { %793 = vsyncadd (!%p637_p5), %s481_s8, 4294967168  ;;  %s19_s23 = sadd.s32 1, %s816_s23   ;;  %s1033_s18 = smov %s800_s19 }
 0x21e   : > { %p16_p6 = scmp.ge.s32.totalorder %s19_s23, 4   ;;  %s1034_s19 = smov %s804_s20 }
 0x21f   : > { %s1035_s20 = smov %s908_s6  ;;  %s1036_s21 = smov %s812_s22 }
 0x220   : > { %s1037_s22 = smov %s1039_s26  ;;  %18 = sbr.rel (!%p16_p6) target bundleno = 5 (0x5), region = 84 }
 0x227   :  { %486 = vsyncpa [#allocation3], 1 }
 0x228   :  { %488 = vsyncpa [#allocation3 + $0x1], 1 }
 0x229   :  { %489 = vsyncpa [#allocation4], 1 }
 0x22a   :  { %491 = vsyncpa [#allocation4 + $0x1], 1 }

</bundles_post_ra>
